<compile_context>
chip_gen: v6e
topology: v6e:2x2x1
jax: 0.10.0
libtpu: 0.0.40
codegen_flags: <defaults>
</compile_context>

<pallas_src>
import functools

import jax
import jax.numpy as jnp
from jax.experimental import pallas as pl
from jax.experimental.pallas import tpu as pltpu

LANE = 128


def _round_up(x, m):
    return ((x + m - 1) // m) * m


def _sublane_min(dtype):
    # Minimum second-to-last-dim tiling per dtype width.
    return {4: 8, 2: 16, 1: 32}[jnp.dtype(dtype).itemsize]


def _largest_tile(dim, cap, multiple):
    """Largest divisor of `dim` that is a multiple of `multiple` and <= cap.

    `dim` is assumed to already be a multiple of `multiple`.
    """
    if dim <= cap:
        return dim
    t = (cap // multiple) * multiple
    while t >= multiple:
        if dim % t == 0:
            return t
        t -= multiple
    return multiple


# ---------------------------------------------------------------------------
# Kernels
# ---------------------------------------------------------------------------
def _linear_kernel_single_k(x_ref, w_ref, b_ref, o_ref):
    # Whole K reduction in one step: no scratch, no epilogue copy.
    o_ref[...] = (
        jnp.dot(x_ref[...], w_ref[...], preferred_element_type=jnp.float32)
        + b_ref[...]
    ).astype(o_ref.dtype)


def _linear_kernel_multi_k(x_ref, w_ref, b_ref, o_ref, acc_ref):
    k = pl.program_id(2)

    @pl.when(k == 0)
    def _():
        acc_ref[...] = jnp.zeros_like(acc_ref)

    acc_ref[...] += jnp.dot(
        x_ref[...], w_ref[...], preferred_element_type=jnp.float32
    )

    @pl.when(k == pl.num_programs(2) - 1)
    def _():
        o_ref[...] = (acc_ref[...] + b_ref[...]).astype(o_ref.dtype)


# ---------------------------------------------------------------------------
# Parameter preparation (do ONCE at init time, not per forward)
# ---------------------------------------------------------------------------
def prepare_classifier_params(weight, bias, *, compute_dtype=None):
    """(C,F) weight -> (Kp,Np) pre-transposed/padded; (C,) bias -> (1,Np) f32."""
    C, F = weight.shape
    compute_dtype = compute_dtype or weight.dtype
    Kp = _round_up(max(F, 1), LANE)
    Np = _round_up(max(C, 1), LANE)

    w_t = weight.T.astype(compute_dtype)
    if Kp != F or Np != C:
        w_t = jnp.pad(w_t, ((0, Kp - F), (0, Np - C)))
    b_p = bias.astype(jnp.float32)
    if Np != C:
        b_p = jnp.pad(b_p, (0, Np - C))
    b_p = b_p.reshape(1, Np)
    return w_t, b_p, C, F


# ---------------------------------------------------------------------------
# Forward (prepared-params path)
# ---------------------------------------------------------------------------
def classifier_forward_prepared(
    x,
    w_t,          # (Kp, Np) pre-transposed, padded, in compute dtype
    b_p,          # (1, Np) f32
    *,
    num_classes,
    num_features,
    out_dtype=None,
    tm_cap=1024,  # prefer large tm: weight streamed ~once
    tn_cap=512,
    tk_cap=2048,
):
    B, F = x.shape
    assert F == num_features, "input feature dim mismatch"
    Kp, Np = w_t.shape
    compute_dtype = w_t.dtype
    out_dtype = out_dtype or jnp.float32  # keep logits f32 (acc is f32 anyway)

    x = x.astype(compute_dtype)

    # dtype-aware sublane minimum for the M axis (shared by x and out blocks).
    sub = max(_sublane_min(compute_dtype), _sublane_min(out_dtype))
    Mp = _round_up(max(B, 1), sub)
    if Mp != B or Kp != F:
        x = jnp.pad(x, ((0, Mp - B), (0, Kp - F)))

    # Tiles: exact divisors of the (minimally) padded dims — no tile-size padding.
    tm = _largest_tile(Mp, tm_cap, sub)
    tk = _largest_tile(Kp, tk_cap, LANE)
    tn = _largest_tile(Np, tn_cap, LANE)
    # v7x megacore: if M collapsed to one tile, try to give N >= 2 tiles.
    if Mp // tm == 1 and Np // tn == 1 and Np >= 2 * LANE:
        tn = _largest_tile(Np, Np // 2, LANE)

    grid_m, grid_n, grid_k = Mp // tm, Np // tn, Kp // tk

    # VMEM budget (double-buffered inputs/outputs + f32 acc), with headroom.
    isz_c = jnp.dtype(compute_dtype).itemsize
    isz_o = jnp.dtype(out_dtype).itemsize
    vmem_est = (
        2 * (tm * tk + tk * tn) * isz_c
        + 2 * tm * tn * isz_o
        + tm * tn * 4
        + 2 * tn * 4
    )
    vmem_limit = int(min(64 << 20, max(vmem_est * 3 // 2, 16 << 20)))

    cost = pl.CostEstimate(
        flops=2 * Mp * Np * Kp,
        bytes_accessed=isz_c * (Mp * Kp * grid_n + Kp * Np * grid_m)
        + isz_o * Mp * Np
        + 4 * Np,
        transcendentals=0,
    )

    if grid_k == 1:
        out_p = pl.pallas_call(
            _linear_kernel_single_k,
            out_shape=jax.ShapeDtypeStruct((Mp, Np), out_dtype),
            grid_spec=pltpu.PrefetchScalarGridSpec(
                num_scalar_prefetch=0,
                grid=(grid_m, grid_n),
                in_specs=[
                    pl.BlockSpec((tm, tk), lambda i, j: (i, 0)),
                    pl.BlockSpec((tk, tn), lambda i, j: (0, j)),
                    pl.BlockSpec((1, tn), lambda i, j: (0, j)),
                ],
                out_specs=pl.BlockSpec((tm, tn), lambda i, j: (i, j)),
            ),
            compiler_params=pltpu.CompilerParams(
                dimension_semantics=("parallel", "parallel"),
                vmem_limit_bytes=vmem_limit,
            ),
            cost_estimate=cost,
        )(x, w_t, b_p)
    else:
        out_p = pl.pallas_call(
            _linear_kernel_multi_k,
            out_shape=jax.ShapeDtypeStruct((Mp, Np), out_dtype),
            grid_spec=pltpu.PrefetchScalarGridSpec(
                num_scalar_prefetch=0,
                grid=(grid_m, grid_n, grid_k),
                in_specs=[
                    pl.BlockSpec((tm, tk), lambda i, j, k: (i, k)),
                    pl.BlockSpec((tk, tn), lambda i, j, k: (k, j)),
                    pl.BlockSpec((1, tn), lambda i, j, k: (0, j)),
                ],
                out_specs=pl.BlockSpec((tm, tn), lambda i, j, k: (i, j)),
                scratch_shapes=[pltpu.VMEM((tm, tn), jnp.float32)],
            ),
            compiler_params=pltpu.CompilerParams(
                dimension_semantics=("parallel", "parallel", "arbitrary"),
                vmem_limit_bytes=vmem_limit,
            ),
            cost_estimate=cost,
        )(x, w_t, b_p)

    # Slice off padding (zero rows/cols contribute nothing to the GEMM).
    return out_p[:B, :num_classes]


# ---------------------------------------------------------------------------
# Convenience path matching the PyTorch module signature (jit this!)
# ---------------------------------------------------------------------------
def classifier_forward(x, weight, bias, *, compute_dtype=None, out_dtype=None):
    """Equivalent to PyTorch nn.Linear(num_input_features, num_classes)(x)."""
    w_t, b_p, C, F = prepare_classifier_params(
        weight, bias, compute_dtype=compute_dtype
    )
    return classifier_forward_prepared(
        x, w_t, b_p, num_classes=C, num_features=F, out_dtype=out_dtype
    )


classifier_forward_jit = jax.jit(
    classifier_forward, static_argnames=("compute_dtype", "out_dtype")
)


if __name__ == "__main__":
    key = jax.random.PRNGKey(0)
    k_x, k_w, k_b, k_x2, k_w2, k_b2 = jax.random.split(key, 6)

    # ---- Case 1: the module's demo shape, f32, fully jitted path ----------
    B = 8
    num_input_features = 32
    num_classes = 16

    x = jax.random.normal(k_x, (B, num_input_features), dtype=jnp.float32)
    bound = 1.0 / jnp.sqrt(jnp.float32(num_input_features))
    weight = jax.random.uniform(
        k_w, (num_classes, num_input_features), dtype=jnp.float32,
        minval=-bound, maxval=bound)
    bias = jax.random.uniform(
        k_b, (num_classes,), dtype=jnp.float32, minval=-bound, maxval=bound)

    out = jax.block_until_ready(classifier_forward_jit(x, weight, bias))
    ref = x @ weight.T + bias
    assert out.shape == (B, num_classes)
    assert out.dtype == jnp.float32
    assert jnp.allclose(out, ref, atol=1e-5, rtol=1e-5)

    # ---- Case 2: bf16 compute path (prepared params, jitted forward) ------
    w_t16, b_p16, C16, F16 = prepare_classifier_params(
        weight, bias, compute_dtype=jnp.bfloat16)
    fwd16 = jax.jit(functools.partial(
        classifier_forward_prepared, num_classes=C16, num_features=F16))
    out16 = jax.block_until_ready(fwd16(x, w_t16, b_p16))
    assert out16.dtype == jnp.float32
    assert jnp.allclose(out16, ref, atol=3e-2, rtol=3e-2)

    # ---- Case 3: ragged medium shape exercising multi-K grid + N split ----
    B2, F2, C2 = 20, 2500, 200
    x2 = jax.random.normal(k_x2, (B2, F2), dtype=jnp.float32)
    bound2 = 1.0 / jnp.sqrt(jnp.float32(F2))
    w2 = jax.random.uniform(k_w2, (C2, F2), dtype=jnp.float32,
                            minval=-bound2, maxval=bound2)
    b2 = jax.random.uniform(k_b2, (C2,), dtype=jnp.float32,
                            minval=-bound2, maxval=bound2)
    out2 = jax.block_until_ready(classifier_forward_jit(x2, w2, b2))
    ref2 = jnp.dot(x2, w2.T, precision=jax.lax.Precision.HIGHEST) + b2
    assert out2.shape == (B2, C2)
    assert jnp.allclose(out2, ref2, atol=2e-3, rtol=2e-3)

    print("KERNEL_OK")
</pallas_src>

<mosaic_0001>
module attributes {stable_mosaic.version = 11 : i64} {
  func.func @_linear_kernel_single_k(%arg0: i32, %arg1: i32, %arg2: memref<8x128xf32, #tpu.memory_space<vmem>>, %arg3: memref<128x128xf32, #tpu.memory_space<vmem>>, %arg4: memref<1x128xf32, #tpu.memory_space<vmem>>, %arg5: memref<8x128xf32, #tpu.memory_space<vmem>>) attributes {dimension_semantics = [#tpu.dimension_semantics<parallel>, #tpu.dimension_semantics<parallel>], iteration_bounds = array<i64: 1, 1>, scalar_prefetch = 0 : i64, scratch_operands = 0 : i64, tpu.core_type = #tpu.core_type<tc>, window_params = [{transform_indices = @transform_0, window_bounds = array<i64: 8, 128>}, {transform_indices = @transform_1, window_bounds = array<i64: 128, 128>}, {transform_indices = @transform_2, window_bounds = array<i64: 1, 128>}, {transform_indices = @transform_3, window_bounds = array<i64: 8, 128>}]} {
    %c0 = arith.constant 0 : index
    %c0_0 = arith.constant 0 : index
    %0 = vector.load %arg2[%c0, %c0_0] : memref<8x128xf32, #tpu.memory_space<vmem>>, vector<8x128xf32>
    %c0_1 = arith.constant 0 : index
    %c0_2 = arith.constant 0 : index
    %1 = vector.load %arg3[%c0_1, %c0_2] : memref<128x128xf32, #tpu.memory_space<vmem>>, vector<128x128xf32>
    %cst = arith.constant dense<0.000000e+00> : vector<8x128xf32>
    %2 = tpu.matmul %0, %1, %cst {dimension_numbers = #tpu.dot_dimension_numbers<[1], [0], [0], [1], [0, 0, 1, 1], [], []>} : vector<8x128xf32>, vector<128x128xf32>, vector<8x128xf32> -> vector<8x128xf32>
    %c0_3 = arith.constant 0 : index
    %c0_4 = arith.constant 0 : index
    %3 = vector.load %arg4[%c0_3, %c0_4] : memref<1x128xf32, #tpu.memory_space<vmem>>, vector<1x128xf32>
    %4 = vector.broadcast %3 : vector<1x128xf32> to vector<8x128xf32>
    %5 = arith.addf %2, %4 : vector<8x128xf32>
    %c0_5 = arith.constant 0 : index
    %c0_6 = arith.constant 0 : index
    %6 = vector.load %arg5[%c0_5, %c0_6] : memref<8x128xf32, #tpu.memory_space<vmem>>, vector<8x128xf32>
    tpu.vector_store %arg5[%c0_5, %c0_6], %5 {strides = array<i32>} : memref<8x128xf32, #tpu.memory_space<vmem>>, vector<8x128xf32>,
    return
  }
  func.func @transform_0(%arg0: i32, %arg1: i32) -> (i32, i32) {
    %c0_i32 = arith.constant 0 : i32
    %c0_i32_0 = arith.constant 0 : i32
    return %arg0, %c0_i32 : i32, i32
  }
  func.func @transform_1(%arg0: i32, %arg1: i32) -> (i32, i32) {
    %c0_i32 = arith.constant 0 : i32
    %c0_i32_0 = arith.constant 0 : i32
    return %c0_i32, %arg1 : i32, i32
  }
  func.func @transform_2(%arg0: i32, %arg1: i32) -> (i32, i32) {
    %c0_i32 = arith.constant 0 : i32
    %c0_i32_0 = arith.constant 0 : i32
    return %c0_i32, %arg1 : i32, i32
  }
  func.func @transform_3(%arg0: i32, %arg1: i32) -> (i32, i32) {
    %c0_i32 = arith.constant 0 : i32
    return %arg0, %arg1 : i32, i32
  }
}

</mosaic_0001>

<bundles_post_ra>
// kernel: classifier_forward.1
= control target key start
LH: loop header
LB: loop body
LE: loop exit
PB: predicated region body
PF: predicated region fallthrough
CT: control target
= control target key end

     0   :  { %v202_v1 = vmov 0.0   ;;  %vm203_vm0 = vmmov 0   ;;  %s282_s0 = inlined_call_operand.vmem [shape: f32[8,128], index: 0, kind: input, shape index: {}]   ;;  %s283_s1 = inlined_call_operand.vmem [shape: f32[128,128], index: 1, kind: input, shape index: {}]   ;;  %s284_s2 = inlined_call_operand.vmem [shape: f32[1,128], index: 2, kind: input, shape index: {}]   ;;  %s285_s3 = inlined_call_operand.hbm [shape: f32[8,128], index: 3, kind: output, shape index: {}]  }
   0x1   :  { %v31_v0 = vld [vmem:[%s283_s1 + $0x78] sm:$0xff]  ;;  %142 = vmatprep.subr.mxu0 %v202_v1  ;;  %v30_v2 = vld [vmem:[%s283_s1 + $0x70] sm:$0xff]  ;;  %174 = vmatprep.mubr.msk.f32.mxu0 %vm203_vm0, %v202_v1  ;;  %v29_v3 = vld [vmem:[%s283_s1 + $0x68] sm:$0xff] }
   0x2   :  { %143 = vmatpush3.msra.mxu0 %v31_v0  ;;  %v28_v4 = vld [vmem:[%s283_s1 + $0x60] sm:$0xff] }
   0x3   :  { %144 = vmatprep.subr.mxu0 %v202_v1 }
   0x4   :  { %145 = vmatpush3.msra.mxu0 %v30_v2 }
   0x5   :  { %146 = vmatprep.subr.mxu0 %v202_v1 }
   0x6   :  { %147 = vmatpush3.msra.mxu0 %v29_v3 }
   0x7   :  { %8 = vsyncpa [#allocation3], 0  ;;  %148 = vmatprep.subr.mxu0 %v202_v1  ;;  %v27_v5 = vld [vmem:[%s283_s1 + $0x58] sm:$0xff]  ;;  %v26_v6 = vld [vmem:[%s283_s1 + $0x50] sm:$0xff]  ;;  %s204_s21 = smov [#allocation2]  }
   0x8   :  { %149 = vmatpush3.msra.mxu0 %v28_v4  ;;  %v25_v7 = vld [vmem:[%s283_s1 + $0x48] sm:$0xff]  ;;  %v24_v8 = vld [vmem:[%s283_s1 + $0x40] sm:$0xff]  ;;  %v23_v9 = vld [vmem:[%s283_s1 + $0x38] sm:$0xff]  ;;  %s116_s22 = sshll.u32 %s204_s21, 4  ;;  %s117_s22 = int_to_ptr.vmem [resolvable:$true] %s116_s22 }
   0x9   :  { %150 = vmatprep.subr.mxu0 %v202_v1  ;;  %v22_v10 = vld [vmem:[%s283_s1 + $0x30] sm:$0xff]  ;;  %v21_v11 = vld [vmem:[%s283_s1 + $0x28] sm:$0xff]  ;;  %v20_v12 = vld [vmem:[%s283_s1 + $0x20] sm:$0xff]  ;;  %p185_p1 = scmp.lt.s32.totalorder %s117_s22, %s117_s22 }
   0xa   :  { %151 = vmatpush3.msra.mxu0 %v27_v5  ;;  %v19_v13 = vld [vmem:[%s283_s1 + $0x18] sm:$0xff]  ;;  %v18_v14 = vld [vmem:[%s283_s1 + $0x10] sm:$0xff]  ;;  %v17_v15 = vld [vmem:[%s283_s1 + $0x8] sm:$0xff] }
   0xb   :  { %152 = vmatprep.subr.mxu0 %v202_v1  ;;  %v16_v16 = vld [vmem:[%s283_s1] sm:$0xff]  ;;  %s180_s1 = scalar_lea.vmem %s117_s22, 128 }
   0xc   :  { %153 = vmatpush3.msra.mxu0 %v26_v6  ;;  %v15_v17 = vld [vmem:[%s282_s0] sm:$0xff]  ;;  %p181_p0 = scmp.ne.s32.totalorder %s117_s22, %s180_s1  ;;  %p186_p2 = scmp.lt.s32.totalorder %s180_s1, %s180_s1 }
   0xd   :  { %154 = vmatprep.subr.mxu0 %v202_v1  ;;  %v124_v18 = vld [vmem:[%s284_s2] ss:$0 sm:$0xff] }
   0xe   :  { %155 = vmatpush3.msra.mxu0 %v25_v7  ;;  %p187_p3 = por %p186_p2, %p185_p1 }
   0xf   :  { %156 = vmatprep.subr.mxu0 %v202_v1 }
  0x10   :  { %157 = vmatpush3.msra.mxu0 %v24_v8  ;;  %p188_p4 = pnand %p187_p3, %p181_p0 }
  0x11   :  { %158 = vmatprep.subr.mxu0 %v202_v1 }
  0x12   :  { %159 = vmatpush3.msra.mxu0 %v23_v9 }
  0x13   :  { %160 = vmatprep.subr.mxu0 %v202_v1 }
  0x14   :  { %161 = vmatpush3.msra.mxu0 %v22_v10 }
  0x15   :  { %162 = vmatprep.subr.mxu0 %v202_v1 }
  0x16   :  { %163 = vmatpush3.msra.mxu0 %v21_v11 }
  0x17   :  { %164 = vmatprep.subr.mxu0 %v202_v1 }
  0x18   :  { %165 = vmatpush3.msra.mxu0 %v20_v12 }
  0x19   :  { %166 = vmatprep.subr.mxu0 %v202_v1 }
  0x1a   :  { %167 = vmatpush3.msra.mxu0 %v19_v13 }
  0x1b   :  { %168 = vmatprep.subr.mxu0 %v202_v1 }
  0x1c   :  { %169 = vmatpush3.msra.mxu0 %v18_v14 }
  0x1d   :  { %170 = vmatprep.subr.mxu0 %v202_v1 }
  0x1e   :  { %171 = vmatpush3.msra.mxu0 %v17_v15 }
  0x1f   :  { %172 = vmatprep.subr.mxu0 %v202_v1 }
  0x20   :  { %173 = vmatpush3.msra.mxu0 %v16_v16 }
  0x21   :  { %175 = vmatmul.mubr.f32.vlgmr.msra.gmra.mxu0 %v15_v17 }
  0xe1   :  { %v105_v19 = vpop.f32.mrf.mxu0 }
  0xe2   :  { %v106_v20 = vadd.f32 %v124_v18, %v105_v19 }
  0xe3   :  { %v176_v21 = vpop.f32.mrf.mxu0 }
  0xe4   :  { %109 = vst [vmem:[#allocation2] sm:$0xff] %v106_v20 }
  0xe5   :  { %191 = shalt.err (!%p188_p4)
}
  0xe6   :  { %119 = dma.vmem_to_hbm [thread:$0]  %s117_s22, 128, %s285_s3, [#allocation3]  }
  0xe7   :  { %200 = dma.done.wait [#allocation3], 128  }
  0xe8   :  { %201 = vsyncadd [#allocation3], 4294967168 }
  0xe9   :  { %123 = vsyncpa [#allocation3], 1 }

</bundles_post_ra>
